<compile_context>
chip_gen: v7x
topology: tpu7x:2x2x1
jax: 0.10.0
libtpu: 0.0.40
codegen_flags: <defaults>
</compile_context>

<pallas_src>
import math

import jax
import jax.numpy as jnp
from jax.experimental import pallas as pl
from jax.experimental.pallas import tpu as pltpu

MAX_CLAMP = -5.0          # module's self.max (self.min is unused in the forward pass)
LANE = 128
MAX_BLOCK_ROWS = 4096     # (4096, 128) f32 = 2 MiB per buffer


def _tail_host(v):
    """Host-side float version of the post-conv2 tail: clamp_max chain + final sigmoid."""
    for c in (MAX_CLAMP, 0.3, -0.3):
        v = min(v, c)
    return 1.0 / (1.0 + math.exp(-v))


# sigmoid(s) is in [0, 1] for every non-NaN s, so tanh(sigmoid(s) + 6) lies in
# [tanh(6), tanh(7)].  The tail above is monotone non-decreasing, hence constant on
# that interval iff its two endpoints agree.  Verified here so the fold cannot go
# silently stale if the clamp constants are ever changed.
_LO = _tail_host(math.tanh(6.0))
_HI = _tail_host(math.tanh(7.0))
assert _LO == _HI, "clamp chain is not degenerate; a full-math kernel would be required"
_CONST_OUT = float(_LO)   # == sigmoid(-5.0) ~= 0.0066928509


def _fused_kernel(params_ref, x_ref, o_ref):
    """Folded forward.

    params_ref (SMEM f32[7]): [w1_0, w1_1, w1_2, b1_0, b1_1, b1_2, const_out]
    x_ref / o_ref (VMEM f32[block_rows, 128]): lane-dense pixel tiles.

    For every non-NaN conv2 pre-activation the original chain collapses to const_out;
    the only non-constant behaviour is NaN propagation, which (for finite conv2
    params) triggers exactly when some conv1 pre-activation z_c is NaN.  So: compute
    z_c (pure VPU), detect NaN, select.  No EUP, no MXU, unmasked 128-lane stores.
    """
    x = x_ref[...]
    z0 = params_ref[0] * x + params_ref[3]
    z1 = params_ref[1] * x + params_ref[4]
    z2 = params_ref[2] * x + params_ref[5]
    nan_mask = jnp.isnan(z0) | jnp.isnan(z1) | jnp.isnan(z2)
    o_ref[...] = jnp.where(nan_mask, jnp.float32(jnp.nan), params_ref[6])


def _round_up(a, b):
    return (a + b - 1) // b * b


def _choose_block_rows(rows):
    if rows <= 8:
        return rows  # single full-dim block (trivially satisfies the (8,128) rule)
    # >= 2 grid steps so both v7x TensorCores get work; <= MAX_BLOCK_ROWS to amortize
    # per-step overhead while keeping the double-buffered VMEM footprint tiny (~8 MiB).
    return min(MAX_BLOCK_ROWS, _round_up(pl.cdiv(rows, 2), 8))


def model_forward(x_nchw, w1, b1, w2, b2):
    """x_nchw: (N,1,H,W) f32. w1: (3,1,1,1), b1: (3,), w2: (1,3,1,1), b2: (1,)."""
    N, C, H, W = x_nchw.shape
    assert C == 1
    P = N * H * W

    # C == 1: NCHW pixel order == NHWC pixel order, so a plain flatten suffices.
    x_flat = x_nchw.reshape(-1).astype(jnp.float32)
    rem = P % LANE
    if rem:
        # Only hit when N*H*W is not a multiple of 128; <=127-element tail pad.
        x_flat = jnp.pad(x_flat, (0, LANE - rem))
    rows = x_flat.shape[0] // LANE
    x2d = x_flat.reshape(rows, LANE)

    block_rows = _choose_block_rows(rows)
    grid = (pl.cdiv(rows, block_rows),)   # boundary block (if any) is masked by Pallas

    # conv2 weights/bias cannot affect the folded output value (see header); unused.
    params = jnp.concatenate([
        w1.reshape(3).astype(jnp.float32),
        b1.reshape(3).astype(jnp.float32),
        jnp.asarray([_CONST_OUT], jnp.float32),
    ])

    out2d = pl.pallas_call(
        _fused_kernel,
        out_shape=jax.ShapeDtypeStruct((rows, LANE), jnp.float32),
        grid=grid,
        in_specs=[
            pl.BlockSpec(memory_space=pltpu.MemorySpace.SMEM),   # params, whole array
            pl.BlockSpec((block_rows, LANE), lambda i: (i, 0)),  # x tile
        ],
        out_specs=pl.BlockSpec((block_rows, LANE), lambda i: (i, 0)),
        compiler_params=pltpu.CompilerParams(
            dimension_semantics=("parallel",),       # shard grid steps across TCs (v7x)
            vmem_limit_bytes=32 * 1024 * 1024,       # safe on 64 MiB (v7x) and 128 MiB parts
        ),
    )(params, x2d)

    out_flat = out2d.reshape(-1)
    if rem:
        out_flat = out_flat[:P]
    return out_flat.reshape(N, 1, H, W)


if __name__ == "__main__":
    key = jax.random.PRNGKey(0)
    kx, k1, k2, k3, k4 = jax.random.split(key, 5)

    # Small shapes consistent with the module (Conv2d(1,3,1) expects 1 input channel);
    # chosen so rows=32 -> block_rows=16 -> a 2-step parallel grid is exercised.
    N, H, W = 2, 32, 64
    x = jax.random.normal(kx, (N, 1, H, W), dtype=jnp.float32)

    # Deterministic parameter init (uniform, roughly matching PyTorch fan-in bounds).
    bound1 = 1.0  # fan_in = 1*1*1
    w1 = jax.random.uniform(k1, (3, 1, 1, 1), minval=-bound1, maxval=bound1, dtype=jnp.float32)
    b1 = jax.random.uniform(k2, (3,), minval=-bound1, maxval=bound1, dtype=jnp.float32)
    bound2 = float(1.0 / 3.0 ** 0.5)  # fan_in = 3*1*1
    w2 = jax.random.uniform(k3, (1, 3, 1, 1), minval=-bound2, maxval=bound2, dtype=jnp.float32)
    b2 = jax.random.uniform(k4, (1,), minval=-bound2, maxval=bound2, dtype=jnp.float32)

    out = model_forward(x, w1, b1, w2, b2)
    jax.block_until_ready(out)

    # Plain-JAX reference of the PyTorch forward (full, un-folded chain).
    h = jax.nn.sigmoid(w1.reshape(1, 3, 1, 1) * x + b1.reshape(1, 3, 1, 1))
    y = jax.nn.sigmoid(jnp.sum(w2.reshape(1, 3, 1, 1) * h, axis=1, keepdims=True)
                       + b2.reshape(1, 1, 1, 1))
    y = jnp.tanh(y + 1.0 + 5.0)
    y = jnp.minimum(jnp.minimum(jnp.minimum(y, MAX_CLAMP), 0.3), -0.3)
    ref = jax.nn.sigmoid(y)

    assert out.shape == (N, 1, H, W)
    assert jnp.allclose(out, ref, atol=1e-6, rtol=1e-6)

    # NaN-propagation semantics are preserved by the fold: a NaN pixel stays NaN,
    # every other pixel still equals the reference.
    x_nan = x.at[0, 0, 0, 0].set(jnp.nan)
    out_nan = model_forward(x_nan, w1, b1, w2, b2)
    assert bool(jnp.isnan(out_nan[0, 0, 0, 0]))
    assert jnp.allclose(out_nan.reshape(-1)[1:], ref.reshape(-1)[1:], atol=1e-6, rtol=1e-6)

    print("KERNEL_OK")
</pallas_src>

<mosaic_0001>
module attributes {stable_mosaic.version = 11 : i64} {
  func.func @_fused_kernel(%arg0: i32, %arg1: memref<7xf32, #tpu.memory_space<smem>>, %arg2: memref<16x128xf32, #tpu.memory_space<vmem>>, %arg3: memref<16x128xf32, #tpu.memory_space<vmem>>) attributes {dimension_semantics = [#tpu.dimension_semantics<parallel>], iteration_bounds = array<i64: 2>, scalar_prefetch = 0 : i64, scratch_operands = 0 : i64, tpu.core_type = #tpu.core_type<tc>, window_params = [{transform_indices = @transform_0, window_bounds = array<i64: 7>}, {transform_indices = @transform_1, window_bounds = array<i64: 16, 128>}, {transform_indices = @transform_2, window_bounds = array<i64: 16, 128>}]} {
    %c0 = arith.constant 0 : index
    %c0_0 = arith.constant 0 : index
    %0 = vector.load %arg2[%c0, %c0_0] : memref<16x128xf32, #tpu.memory_space<vmem>>, vector<16x128xf32>
    %c0_1 = arith.constant 0 : index
    %1 = memref.load %arg1[%c0_1] : memref<7xf32, #tpu.memory_space<smem>>
    %2 = vector.broadcast %1 : f32 to vector<16x128xf32>
    %3 = arith.mulf %2, %0 : vector<16x128xf32>
    %c3 = arith.constant 3 : index
    %4 = memref.load %arg1[%c3] : memref<7xf32, #tpu.memory_space<smem>>
    %5 = vector.broadcast %4 : f32 to vector<16x128xf32>
    %6 = arith.addf %3, %5 : vector<16x128xf32>
    %c1 = arith.constant 1 : index
    %7 = memref.load %arg1[%c1] : memref<7xf32, #tpu.memory_space<smem>>
    %8 = vector.broadcast %7 : f32 to vector<16x128xf32>
    %9 = arith.mulf %8, %0 : vector<16x128xf32>
    %c4 = arith.constant 4 : index
    %10 = memref.load %arg1[%c4] : memref<7xf32, #tpu.memory_space<smem>>
    %11 = vector.broadcast %10 : f32 to vector<16x128xf32>
    %12 = arith.addf %9, %11 : vector<16x128xf32>
    %c2 = arith.constant 2 : index
    %13 = memref.load %arg1[%c2] : memref<7xf32, #tpu.memory_space<smem>>
    %14 = vector.broadcast %13 : f32 to vector<16x128xf32>
    %15 = arith.mulf %14, %0 : vector<16x128xf32>
    %c5 = arith.constant 5 : index
    %16 = memref.load %arg1[%c5] : memref<7xf32, #tpu.memory_space<smem>>
    %17 = vector.broadcast %16 : f32 to vector<16x128xf32>
    %18 = arith.addf %15, %17 : vector<16x128xf32>
    %19 = arith.cmpf one, %6, %6 : vector<16x128xf32>
    %20 = arith.cmpf one, %12, %12 : vector<16x128xf32>
    %21 = arith.ori %19, %20 : vector<16x128xi1>
    %22 = arith.cmpf one, %18, %18 : vector<16x128xf32>
    %23 = arith.ori %21, %22 : vector<16x128xi1>
    %c6 = arith.constant 6 : index
    %24 = memref.load %arg1[%c6] : memref<7xf32, #tpu.memory_space<smem>>
    %cst = arith.constant 0x7FC00000 : f32
    %25 = vector.broadcast %cst : f32 to vector<16x128xf32>
    %26 = vector.broadcast %24 : f32 to vector<16x128xf32>
    %27 = arith.select %23, %25, %26 : vector<16x128xi1>, vector<16x128xf32>
    %c0_2 = arith.constant 0 : index
    %c0_3 = arith.constant 0 : index
    %28 = vector.load %arg3[%c0_2, %c0_3] : memref<16x128xf32, #tpu.memory_space<vmem>>, vector<16x128xf32>
    tpu.vector_store %arg3[%c0_2, %c0_3], %27 {strides = array<i32>} : memref<16x128xf32, #tpu.memory_space<vmem>>, vector<16x128xf32>,
    return
  }
  func.func @transform_0(%arg0: i32) -> i32 {
    %c0_i32 = arith.constant 0 : i32
    %c0_i32_0 = arith.constant 0 : i32
    return %c0_i32 : i32
  }
  func.func @transform_1(%arg0: i32) -> (i32, i32) {
    %c0_i32 = arith.constant 0 : i32
    %c0_i32_0 = arith.constant 0 : i32
    return %arg0, %c0_i32 : i32, i32
  }
  func.func @transform_2(%arg0: i32) -> (i32, i32) {
    %c0_i32 = arith.constant 0 : i32
    %c0_i32_0 = arith.constant 0 : i32
    return %arg0, %c0_i32 : i32, i32
  }
}

</mosaic_0001>

<bundles_post_ra>
// kernel: tpu_custom_call.1
= control target key start
LH: loop header
LB: loop body
LE: loop exit
PB: predicated region body
PF: predicated region fallthrough
CT: control target
= control target key end

     0   :  { %7 = vsyncpa [#allocation5], 0  ;;  %s736_s0 = inlined_call_operand.hbm [shape: f32[7], index: 0, kind: input, shape index: {}]   ;;  %s737_s1 = inlined_call_operand.hbm [shape: f32[32,128], index: 1, kind: input, shape index: {}]   ;;  %s738_s2 = inlined_call_operand.hbm [shape: f32[32,128], index: 2, kind: output, shape index: {}]  }
   0x1   :  { %8 = vsyncpa [#allocation3], 0 }
   0x2   :  { %10 = vsyncpa [#allocation3 + $0x1], 0 }
   0x3   :  { %11 = vsyncpa [#allocation4], 0 }
   0x4   :  { %13 = vsyncpa [#allocation4 + $0x1], 0  ;;  %s539_s9 = smov 0   ;;  %s541_s10 = smov 0  }
   0x5   :  { %s543_s11 = smov 0   ;;  %s545_s12 = smov 0  }
   0x6 LB: > { %s560_s13 = sadd.s32 4294967295, %s515_s12   ;;  %s317_s14 = sadd.s32 4294967294, %s515_s12   ;;  %s515_s12 = sphi %s545_s12, %s758_s12   ;;  %s511_s11 = sphi %s543_s11, %s757_s11   ;;  %s507_s10 = sphi %s541_s10, %s756_s10   ;;  %s503_s9 = sphi %s539_s9, %s755_s9  }
   0x7   : > { %s564_s15 = sadd.s32 1, %s515_s12   ;;  %s47_s16 = sadd.s32 1, %s511_s11 }
   0x8   : > { %s44_s17 = ssub.s32 %s515_s12, %s564_s15  ;;  %p54_p0 = scmp.ne.s32.totalorder %s511_s11, %s507_s10 }
   0x9   : > { %p45_p1 = scmp.eq.s32.totalorder %s44_s17, 0  ;;  %p55_p2 = scmp.eq.s32.totalorder %s515_s12, 0 }
   0xa   : > { %p60_p3 = scmp.ne.s32.totalorder %s507_s10, %s503_s9  ;;  %p739_p4 = scmp.eq.s32.totalorder %s560_s13, 0 }
   0xb   : > { %s576_s18 = scalar_select %p45_p1, %s511_s11, %s47_s16  }
   0xc   : > { %p578_p5 = por %p55_p2, %p54_p0  ;;  %p584_p6 = por %p739_p4, %p60_p3 }
   0xd   : > { %p84_p7 = scmp.eq.s32.totalorder %s560_s13, 1  ;;  %p90_p8 = scmp.eq.s32.totalorder %s317_s14, 1 }
   0xe   : > { %s743_s20 = scalar_select %p584_p6, 1, 0 }
   0xf   : > { %p318_p9 = scmp.ge.s32.totalorder %s515_s12, 1  ;;  %p97_p10 = scmp.lt.s32.totalorder %s515_s12, 3 }
  0x10   : > { %p591_p11 = por %p84_p7, %p54_p0  ;;  %p595_p12 = por %p90_p8, %p60_p3 }
  0x11   : > { %p599_p13 = pnand %p318_p9, %p97_p10  ;;  %p362_p4 = scmp.lt.s32.totalorder %s515_s12, 2 }
  0x12   : > { %s744_s21 = scalar_select %p591_p11, 1, 0 }
  0x13   : > { %s745_s22 = scalar_select %p595_p12, 1, 0 }
  0x14   : > { %p349_p2 = pneg %p599_p13  ;;  %s119_s24 = sand.u32 1, %s511_s11  }
  0x15   : > { %s339_s25 = sshll.u32 %s515_s12, 8  ;;  %p747_p6 = scmp.eq.s32.totalorder %s560_s13, 0 }
  0x16   : > { %p613_p7 = pnand %p362_p4, %p578_p5  ;;  %s321_s27 = sshll.u32 %s119_s24, 4 }
  0x17   : > { %p350_p0 = pnand %p349_p2, %p747_p6  ;;  %s402_s30 = scalar_lea.hbm %s736_s0, 16 }
  0x18   : > { %p403_p3 = scmp.ne.s32.totalorder %s736_s0, %s402_s30  ;;  %p409_p6 = scmp.lt.u32.totalorder %s402_s30, %s736_s0 }
  0x19   : > { %p404_p8 = pneg %p350_p0 }
  0x1b   : > { %p405_p9 = pnand %p404_p8, %p403_p3 }
  0x1d   : > { %p406_p10 = pneg %p405_p9 }
  0x1f   : > { %p411_p4 = pnand %p409_p6, %p406_p10 }
  0x21   : > { %414 = shalt.err (!%p411_p4)
}
  0x22   : > { %s517_s7 = smov [#allocation2]   ;;  %s632_s19 = scalar_lea.hbm %s737_s1, %s339_s25 }
  0x23   : > { %352 = dma.hbm_to_smem (!%p350_p0), %s736_s0, 16, %s517_s7, [#allocation5]  }
  0x24   : > { %s123_s28 = scalar_lea.vmem [#allocation6], %s321_s27  ;;  %s636_s30 = scalar_lea.sflag [#allocation3], %s119_s24 }
  0x25   : > { %s130_s29 = sshll.u32 %s123_s28, 4  ;;  %s415_s3 = scalar_lea.hbm %s632_s19, 256  ;;  %s634_s29 = int_to_ptr.vmem [resolvable:$true] %s130_s29 }
  0x26   : > { %p416_p5 = scmp.ne.s32.totalorder %s632_s19, %s415_s3  ;;  %p417_p2 = pneg %p613_p7 }
  0x27   : > { %s420_s5 = scalar_lea.hbm %s737_s1, 512  ;;  %p421_p8 = scmp.lt.u32.totalorder %s632_s19, %s737_s1 }
  0x28   : > { %p418_p0 = pnand %p417_p2, %p416_p5  ;;  %p422_p9 = scmp.lt.u32.totalorder %s420_s5, %s415_s3 }
  0x29   : > { %p424_p6 = scmp.lt.u32.totalorder %s415_s3, %s632_s19 }
  0x2a   : > { %p419_p3 = pneg %p418_p0  ;;  %p423_p10 = por %p422_p9, %p421_p8 }
  0x2c   : > { %p425_p4 = por %p424_p6, %p423_p10 }
  0x2e   : > { %p426_p1 = pnand %p425_p4, %p419_p3 }
  0x30   : > { %429 = shalt.err (!%p426_p1)
}
  0x31   : > { %s430_s24 = scalar_lea.vmem %s634_s29, 256  ;;  %s518_s27 = smov [#allocation6]  }
  0x32   : > { %p431_p5 = scmp.ne.s32.totalorder %s634_s29, %s430_s24  ;;  %s435_s8 = sshll.u32 %s518_s27, 4  ;;  %s436_s8 = int_to_ptr.vmem [resolvable:$false] %s435_s8 }
  0x33   : > { %s437_s14 = scalar_lea.vmem %s436_s8, 512  ;;  %p438_p11 = scmp.lt.s32.totalorder %s634_s29, %s436_s8 }
  0x34   : > { %p433_p0 = pnand %p431_p5, %p417_p2  ;;  %p439_p8 = scmp.lt.s32.totalorder %s437_s14, %s430_s24 }
  0x36   : > { %p434_p12 = pneg %p433_p0  ;;  %p440_p9 = por %p439_p8, %p438_p11 }
  0x38   : > { %p441_p10 = pnand %p440_p9, %p434_p12 }
  0x3a   : > { %444 = shalt.err (!%p441_p10)
}
  0x3b   : > { %s519_s16 = smov 128   ;;  %s520_s17 = smov 8  }
  0x3c   : > { %356 = dma.hbm_to_vmem [thread:$0]  (!%p613_p7), %s632_s19, 256, %s634_s29, %s636_s30, %s519_s16, %s519_s16, %s520_s17  }
  0x3d   : > { %142 = sbr.rel (%p599_p13) target bundleno = 108 (0x6c), region = 28  ;;  %p749_p1 = scmp.eq.s32.totalorder (!%p599_p13), %s560_s13, 0 }
  0x44   : > { %490 = dma.done.wait (%p749_p1), [#allocation5], 16   ;;  %p750_p2 = pmov %p749_p1 }
  0x45   : > { %s671_s28 = sand.u32 1, %s507_s10   ;;  %p751_p11 = scmp.ne.s32.totalorder %s743_s20, 0 }
  0x46   : > { %492 = vsyncadd (%p750_p2), [#allocation5], 4294967280  ;;  %s326_s3 = sshll.u32 %s671_s28, 4  ;;  %s149_s25 = scalar_lea.sflag [#allocation3], %s671_s28 }
  0x47   : > { %s152_s26 = scalar_lea.vmem [#allocation6], %s326_s3 }
  0x48   : > { %494 = dma.done.wait (%p751_p11), %s149_s25, 256  }
  0x49   : > { %496 = vsyncadd (%p751_p11), %s149_s25, 4294967040 }
  0x4a   : > { %157 = sfence }
  0x4b   : > { %s178_s23 = sld [smem:[#allocation2]]  ;;  %s328_s19 = sld [smem:[#allocation2 + $0x3]]  ;;  %v176_v0 = vld [vmem:[%s152_s26] sm:$0xff]  ;;  %v177_v1 = vld [vmem:[%s152_s26 + $0x8] sm:$0xff] }
  0x4c   : > { %s329_s29 = sld [smem:[#allocation2 + $0x1]]  ;;  %s330_s30 = sld [smem:[#allocation2 + $0x4]] }
  0x4d   : > { %s331_s4 = sld [smem:[#allocation2 + $0x2]]  ;;  %s332_s5 = sld [smem:[#allocation2 + $0x5]] }
  0x4e   : > { %s681_s6 = sld [smem:[#allocation2 + $0x6]]  ;;  %s173_s20 = scalar_lea.vmem [#allocation7], %s326_s3 }
  0x4f   : > { %s232_s7 = sshll.u32 %s173_s20, 4  ;;  %s340_s24 = sshll.u32 %s560_s13, 8  ;;  %s687_s7 = int_to_ptr.vmem [resolvable:$true] %s232_s7 }
  0x50   : > { %s692_s14 = scalar_lea.hbm %s738_s2, %s340_s24  ;;  %s219_s13 = scalar_lea.sflag [#allocation4], %s671_s28 }
  0x51   : > { %v179_v2 = vstv %s178_s23  ;;  %v183_v4 = vstv %s328_s19  ;;  %s445_s16 = scalar_lea.vmem %s687_s7, 256  ;;  %p752_p13 = scmp.ne.s32.totalorder %s744_s21, 0 }
  0x52   : > { %v180_v3 = vmul.f32 %v179_v2, %v176_v0  ;;  %v187_v5 = vstv %s329_s29  ;;  %v181_v6 = vmul.f32 %v179_v2, %v177_v1  ;;  %v191_v8 = vstv %s330_s30  ;;  %p446_p12 = scmp.ne.s32.totalorder %s687_s7, %s445_s16  ;;  %s521_s17 = smov [#allocation7]  }
  0x53   : > { %v188_v7 = vmul.f32 %v187_v5, %v176_v0  ;;  %v195_v9 = vstv %s331_s4  ;;  %v189_v10 = vmul.f32 %v187_v5, %v177_v1  ;;  %v199_v13 = vstv %s332_s5  ;;  %s449_s3 = sshll.u32 %s521_s17, 4  ;;  %s450_s3 = int_to_ptr.vmem [resolvable:$false] %s449_s3 }
  0x54   : > { %v184_v11 = vadd.f32 %v183_v4, %v180_v3  ;;  %v196_v12 = vmul.f32 %v195_v9, %v176_v0  ;;  %v185_v15 = vadd.f32 %v183_v4, %v181_v6  ;;  %v197_v17 = vmul.f32 %v195_v9, %v177_v1  ;;  %p447_p7 = pnand %p446_p12, %p752_p13  ;;  %s451_s25 = scalar_lea.vmem %s450_s3, 512 }
  0x55   : > { %v192_v14 = vadd.f32 %v191_v8, %v188_v7  ;;  %v193_v16 = vadd.f32 %v191_v8, %v189_v10  ;;  %v213_v19 = vstv %s681_s6  ;;  %p452_p6 = scmp.lt.s32.totalorder %s687_s7, %s450_s3  ;;  %p453_p4 = scmp.lt.s32.totalorder %s451_s25, %s445_s16 }
  0x56   : > { %v200_v18 = vadd.f32 %v199_v13, %v196_v12  ;;  %vm202_vm0 = vcmp.ne.f32.partialorder %v184_v11, %v184_v11  ;;  %v201_v20 = vadd.f32 %v199_v13, %v197_v17  ;;  %vm203_vm2 = vcmp.ne.f32.partialorder %v185_v15, %v185_v15  ;;  %p448_p3 = pneg %p447_p7 }
  0x57   : > { %vm204_vm1 = vcmp.ne.f32.partialorder %v192_v14, %v192_v14  ;;  %vm205_vm3 = vcmp.ne.f32.partialorder %v193_v16, %v193_v16  ;;  %p454_p5 = por %p453_p4, %p452_p6 }
  0x58   : > { %vm206_vm4 = vmor %vm202_vm0, %vm204_vm1  ;;  %vm208_vm5 = vcmp.ne.f32.partialorder %v200_v18, %v200_v18  ;;  %vm209_vm7 = vcmp.ne.f32.partialorder %v201_v20, %v201_v20 }
  0x59   : > { %vm210_vm6 = vmor %vm206_vm4, %vm208_vm5  ;;  %p455_p0 = pnand %p454_p5, %p448_p3 }
  0x5a   : > { %v214_v21 = vsel %vm210_vm6, nan, %v213_v19  ;;  %vm207_vm8 = vmor %vm203_vm2, %vm205_vm3 }
  0x5b   : > { %216 = vst [vmem:[%s173_s20] sm:$0xff] %v214_v21  ;;  %vm211_vm9 = vmor %vm207_vm8, %vm209_vm7 }
  0x5c   : > { %v215_v22 = vsel %vm211_vm9, nan, %v213_v19 }
  0x5d   : > { %217 = vst [vmem:[%s173_s20 + $0x8] sm:$0xff] %v215_v22 }
  0x5e   : > { %458 = shalt.err (!%p455_p0)
}
  0x5f   : > { %s459_s26 = scalar_lea.hbm %s692_s14, 256  ;;  %s463_s29 = scalar_lea.hbm %s738_s2, 512 }
  0x60   : > { %p460_p8 = scmp.ne.s32.totalorder %s692_s14, %s459_s26  ;;  %p464_p1 = scmp.lt.u32.totalorder %s692_s14, %s738_s2 }
  0x61   : > { %p465_p2 = scmp.lt.u32.totalorder %s463_s29, %s459_s26  ;;  %p467_p12 = scmp.lt.u32.totalorder %s459_s26, %s692_s14 }
  0x62   : > { %p461_p9 = pnand %p460_p8, %p752_p13 }
  0x63   : > { %p466_p11 = por %p465_p2, %p464_p1 }
  0x64   : > { %p462_p10 = pneg %p461_p9 }
  0x65   : > { %p468_p7 = por %p467_p12, %p466_p11 }
  0x67   : > { %p469_p3 = pnand %p468_p7, %p462_p10 }
  0x69   : > { %472 = shalt.err (!%p469_p3)
}
  0x6a   : > { %s522_s5 = smov 128   ;;  %s523_s6 = smov 8  }
  0x6b   : > { %347 = dma.vmem_to_hbm [thread:$0]  (%p752_p13), %s687_s7, 256, %s692_s14, %s219_s13, %s522_s5, %s522_s5, %s523_s6  }
  0x6c PF: > { %s247_s20 = sand.u32 1, %s503_s9   ;;  %p753_p6 = scmp.ne.s32.totalorder %s745_s22, 0 }
  0x6d   : > { %p754_p4 = scmp.ge.s32.totalorder %s515_s12, 2  ;;  %s248_s24 = scalar_lea.sflag [#allocation4], %s247_s20 }
  0x6f   : > { %p358_p5 = pnand %p754_p4, %p753_p6 }
  0x71   : > { %498 = dma.done.wait (!%p358_p5), %s248_s24, 256  }
  0x72   : > { %500 = vsyncadd (!%p358_p5), %s248_s24, 4294967040  ;;  %p16_p0 = scmp.ge.s32.totalorder %s564_s15, 4   ;;  %s755_s9 = smov %s507_s10 }
  0x73   : > { %s756_s10 = smov %s511_s11  ;;  %s757_s11 = smov %s576_s18 }
  0x74   : > { %s758_s12 = smov %s564_s15  ;;  %18 = sbr.rel (!%p16_p0) target bundleno = 6 (0x6), region = 78 }
  0x7b   :  { %253 = vsyncpa [#allocation3], 1 }
  0x7c   :  { %255 = vsyncpa [#allocation3 + $0x1], 1 }
  0x7d   :  { %256 = vsyncpa [#allocation4], 1 }
  0x7e   :  { %258 = vsyncpa [#allocation4 + $0x1], 1 }
  0x7f   :  { %259 = vsyncpa [#allocation5], 1 }
  0x80   :  { %261 = vsyncpa [#allocation5 + $0x1], 1 }

</bundles_post_ra>
